<compile_context>
chip_gen: v7x
topology: tpu7x:2x2x1
jax: 0.10.0
libtpu: 0.0.40
codegen_flags: <defaults>
</compile_context>

<pallas_src>
import numpy as np
import jax
import jax.numpy as jnp
from jax.experimental import pallas as pl
from jax.experimental.pallas import tpu as pltpu


def _pad_to(x: int, m: int) -> int:
    return -(-x // m) * m


def _divisors(n: int):
    ds = set()
    i = 1
    while i * i <= n:
        if n % i == 0:
            ds.add(i)
            ds.add(n // i)
        i += 1
    return sorted(ds)


def _sublane_multiple(itemsize: int) -> int:
    # Native vreg sublane packing: (8,128) for 32-bit, (16,128) bf16, (32,128) 8-bit.
    return max(8, 8 * (4 // max(1, itemsize)))


def _chip_budgets():
    """Return (per-operand tile target bytes, cap for vmem_limit_bytes)."""
    try:
        kind = jax.devices()[0].device_kind.lower()
    except Exception:  # pragma: no cover - be robust to exotic backends
        kind = ""
    is_v7 = ("v7" in kind) or ("7x" in kind)
    # v5e/v6e: ~2 MiB/operand already sits on the HBM-roofline plateau.
    # v7x: ~3.2 TB/s HBM makes the ~0.35us per-step overhead relatively larger,
    # so use ~4 MiB tiles; 6 x 4 MiB double-buffered blocks fit its 64 MiB VMEM.
    tile_target = (4 << 20) if is_v7 else (2 << 20)
    vmem_cap = (48 << 20) if is_v7 else (100 << 20)
    return tile_target, vmem_cap


def _choose_split(half_flat: int, sub_mult: int):
    """Factor half_flat = R * L maximising vreg fill; prefer lane-dense L."""
    best, best_score = None, None
    for L in _divisors(half_flat):
        R = half_flat // L
        lane_fill = L / _pad_to(L, 128)
        sublane_fill = min(R, sub_mult) / sub_mult
        score = (lane_fill * sublane_fill,        # vreg fill (dtype-aware)
                 L % 128 == 0,                    # unmasked vst
                 512 <= L <= 4096,                # long contiguous runs
                 -abs(L - 1024))
        if best_score is None or score > best_score:
            best, best_score = (R, L), score
    return best


def _choose_block(prefix, R, L, itemsize, sub_mult, tile_target):
    """Pick (prefix_block, row_block) sized against the *padded* VMEM footprint."""
    padded_L = _pad_to(L, 128)
    row_bytes = padded_L * itemsize
    budget_rows = max(1, tile_target // row_bytes)

    if R <= sub_mult or budget_rows >= R:
        r_tile = R  # full-extent second-to-last dim: always legal
    else:
        # Partial row blocks must be a multiple of 8; sub_mult keeps vregs packed.
        r_tile = min(R, max(sub_mult, (budget_rows // sub_mult) * sub_mult))

    slab_bytes = _pad_to(r_tile, sub_mult) * row_bytes
    pb = max(1, min(prefix, tile_target // max(1, slab_bytes)))
    return pb, r_tile


def _enforce_min_steps(prefix, R, L, itemsize, pb, r_tile, sub_mult):
    """Keep enough grid steps for DMA/compute overlap and the v7x 2-TC split,
    without shrinking tiles below ~1 MiB of useful output each."""
    total_out_bytes = prefix * R * L * itemsize
    desired = int(min(8, max(1, total_out_bytes // (1 << 20))))

    def steps(pb_, rt_):
        return (-(-prefix // pb_)) * (-(-R // rt_))

    while steps(pb, r_tile) < desired and pb > 1:
        pb = (pb + 1) // 2
    while steps(pb, r_tile) < desired:
        cand = ((r_tile // 2) // sub_mult) * sub_mult
        if sub_mult <= cand < r_tile:
            r_tile = cand
        else:
            break
    return pb, r_tile


def _glu_kernel(out_half_ref, gate_half_ref, o_ref):
    # f32 math: essentially free here (kernel is DMA-bound, huge VPU/EUP slack),
    # needed on v5e (no bf16 VPU/EUP) and improves numerics on all generations.
    a = out_half_ref[...].astype(jnp.float32)
    g = gate_half_ref[...].astype(jnp.float32)
    o_ref[...] = (a * jax.nn.sigmoid(g)).astype(o_ref.dtype)


def glu(x: jax.Array, dim: int) -> jax.Array:
    """Pallas implementation of torch.nn.GLU: chunk(2, dim) -> a * sigmoid(g)."""
    ndim = x.ndim
    dim = dim % ndim
    C = x.shape[dim]
    if C % 2 != 0:
        raise ValueError("GLU requires an even size along the chunked dimension")
    half = C // 2

    prefix = int(np.prod(x.shape[:dim], dtype=np.int64))
    tail = int(np.prod(x.shape[dim + 1:], dtype=np.int64))
    half_flat = half * tail

    itemsize = x.dtype.itemsize
    sub_mult = _sublane_multiple(itemsize)
    tile_target, vmem_cap = _chip_budgets()

    # TODO(synk): shapes whose half_flat has no factorisation that fits a tile
    # (e.g. a huge prime last dim) would need an extra lane-tiling grid axis.
    R, L = _choose_split(half_flat, sub_mult)
    pb, r_tile = _choose_block(prefix, R, L, itemsize, sub_mult, tile_target)
    pb, r_tile = _enforce_min_steps(prefix, R, L, itemsize, pb, r_tile, sub_mult)

    # Padded footprint of one block; 2 input halves + 1 output, double-buffered,
    # +25% headroom + ~2 MiB for compiler-internal scratch. Never below the
    # smallest default scoped limit (16 MiB), never above a safe physical cap.
    padded_L = _pad_to(L, 128)
    block_bytes = pb * _pad_to(r_tile, sub_mult) * padded_L * itemsize
    vmem_limit = int(min(vmem_cap,
                         max(16 << 20, int(6 * block_bytes * 1.25) + (2 << 20))))

    x4 = x.reshape(prefix, 2, R, L)
    grid = (pl.cdiv(prefix, pb), pl.cdiv(R, r_tile))

    out3 = pl.pallas_call(
        _glu_kernel,
        out_shape=jax.ShapeDtypeStruct((prefix, R, L), x.dtype),
        grid=grid,
        in_specs=[
            # "outputs" half: chunk index 0 along axis 1 (squeezed away).
            pl.BlockSpec((pb, None, r_tile, L), lambda p, r: (p, 0, r, 0)),
            # "gate" half: chunk index 1 along axis 1 (squeezed away).
            pl.BlockSpec((pb, None, r_tile, L), lambda p, r: (p, 1, r, 0)),
        ],
        out_specs=pl.BlockSpec((pb, r_tile, L), lambda p, r: (p, r, 0)),
        compiler_params=pltpu.CompilerParams(
            dimension_semantics=("parallel", "parallel"),
            vmem_limit_bytes=vmem_limit),
    )(x4, x4)

    return out3.reshape(x.shape[:dim] + (half,) + x.shape[dim + 1:])


if __name__ == "__main__":
    key = jax.random.PRNGKey(0)
    ks = jax.random.split(key, 5)

    def _ref(x, d):
        a, g = jnp.split(x, 2, axis=d)
        return a * jax.nn.sigmoid(g)

    # 1) NCHW input, GLU over channels: (2, 8, 16, 16) -> (2, 4, 16, 16).
    x1 = jax.random.normal(ks[0], (2, 8, 16, 16), dtype=jnp.float32)
    y1 = jax.block_until_ready(glu(x1, dim=1))
    assert y1.shape == (2, 4, 16, 16)
    np.testing.assert_allclose(np.asarray(y1), np.asarray(_ref(x1, 1)),
                               rtol=1e-6, atol=1e-6)

    # 2) Awkward non-128-aligned shape (full-extent fallback tiles).
    x2 = jax.random.normal(ks[1], (2, 6, 5, 10), dtype=jnp.float32)
    y2 = jax.block_until_ready(glu(x2, dim=1))
    assert y2.shape == (2, 3, 5, 10)
    np.testing.assert_allclose(np.asarray(y2), np.asarray(_ref(x2, 1)),
                               rtol=1e-6, atol=1e-6)

    # 3) GLU over the last dim (typical MLP-style usage).
    x3 = jax.random.normal(ks[2], (4, 8, 2048), dtype=jnp.float32)
    y3 = jax.block_until_ready(glu(x3, dim=-1))
    assert y3.shape == (4, 8, 1024)
    np.testing.assert_allclose(np.asarray(y3), np.asarray(_ref(x3, -1)),
                               rtol=1e-6, atol=1e-6)

    # 4) bf16 input (dtype-aware sublane packing + f32 internal compute).
    x4 = jax.random.normal(ks[3], (4, 8, 512), dtype=jnp.bfloat16)
    y4 = jax.block_until_ready(glu(x4, dim=-1))
    assert y4.shape == (4, 8, 256)
    np.testing.assert_allclose(np.asarray(y4, dtype=np.float32),
                               np.asarray(_ref(x4.astype(jnp.float32), -1)),
                               rtol=2e-2, atol=2e-2)

    # 5) Large enough to force a multi-step (pipelined) grid.
    x5 = jax.random.normal(ks[4], (2, 256, 16, 128), dtype=jnp.float32)
    y5 = jax.block_until_ready(glu(x5, dim=1))
    assert y5.shape == (2, 128, 16, 128)
    np.testing.assert_allclose(np.asarray(y5), np.asarray(_ref(x5, 1)),
                               rtol=1e-6, atol=1e-6)

    print("KERNEL_OK")
</pallas_src>

<mosaic_0001>
module attributes {stable_mosaic.version = 11 : i64} {
  func.func @_glu_kernel(%arg0: i32, %arg1: i32, %arg2: memref<2x1x8x128xf32, #tpu.memory_space<vmem>>, %arg3: memref<2x1x8x128xf32, #tpu.memory_space<vmem>>, %arg4: memref<2x8x128xf32, #tpu.memory_space<vmem>>) attributes {dimension_semantics = [#tpu.dimension_semantics<parallel>, #tpu.dimension_semantics<parallel>], iteration_bounds = array<i64: 1, 1>, scalar_prefetch = 0 : i64, scratch_operands = 0 : i64, tpu.core_type = #tpu.core_type<tc>, window_params = [{transform_indices = @transform_0, window_bounds = array<i64: 2, 1, 8, 128>}, {transform_indices = @transform_1, window_bounds = array<i64: 2, 1, 8, 128>}, {transform_indices = @transform_2, window_bounds = array<i64: 2, 8, 128>}]} {
    %c0 = arith.constant 0 : index
    %c0_0 = arith.constant 0 : index
    %c0_1 = arith.constant 0 : index
    %c0_2 = arith.constant 0 : index
    %0 = vector.load %arg2[%c0, %c0_0, %c0_1, %c0_2] : memref<2x1x8x128xf32, #tpu.memory_space<vmem>>, vector<2x1x8x128xf32>
    %1 = vector.shape_cast %0 : vector<2x1x8x128xf32> to vector<2x8x128xf32>
    %c0_3 = arith.constant 0 : index
    %c0_4 = arith.constant 0 : index
    %c0_5 = arith.constant 0 : index
    %c0_6 = arith.constant 0 : index
    %2 = vector.load %arg3[%c0_3, %c0_4, %c0_5, %c0_6] : memref<2x1x8x128xf32, #tpu.memory_space<vmem>>, vector<2x1x8x128xf32>
    %3 = vector.shape_cast %2 : vector<2x1x8x128xf32> to vector<2x8x128xf32>
    %4 = arith.negf %3 : vector<2x8x128xf32>
    %5 = math.exp %4 : vector<2x8x128xf32>
    %cst = arith.constant 1.000000e+00 : f32
    %6 = vector.broadcast %cst : f32 to vector<2x8x128xf32>
    %7 = arith.addf %6, %5 : vector<2x8x128xf32>
    %8 = arith.divf %6, %7 : vector<2x8x128xf32>
    %9 = arith.mulf %1, %8 : vector<2x8x128xf32>
    %c0_7 = arith.constant 0 : index
    %c0_8 = arith.constant 0 : index
    %c0_9 = arith.constant 0 : index
    %10 = vector.load %arg4[%c0_7, %c0_8, %c0_9] : memref<2x8x128xf32, #tpu.memory_space<vmem>>, vector<2x8x128xf32>
    tpu.vector_store %arg4[%c0_7, %c0_8, %c0_9], %9 {strides = array<i32>} : memref<2x8x128xf32, #tpu.memory_space<vmem>>, vector<2x8x128xf32>,
    return
  }
  func.func @transform_0(%arg0: i32, %arg1: i32) -> (i32, i32, i32, i32) {
    %c0_i32 = arith.constant 0 : i32
    %c0_i32_0 = arith.constant 0 : i32
    %c0_i32_1 = arith.constant 0 : i32
    return %arg0, %c0_i32, %arg1, %c0_i32_0 : i32, i32, i32, i32
  }
  func.func @transform_1(%arg0: i32, %arg1: i32) -> (i32, i32, i32, i32) {
    %c1_i32 = arith.constant 1 : i32
    %c0_i32 = arith.constant 0 : i32
    %c0_i32_0 = arith.constant 0 : i32
    return %arg0, %c1_i32, %arg1, %c0_i32 : i32, i32, i32, i32
  }
  func.func @transform_2(%arg0: i32, %arg1: i32) -> (i32, i32, i32) {
    %c0_i32 = arith.constant 0 : i32
    %c0_i32_0 = arith.constant 0 : i32
    return %arg0, %arg1, %c0_i32 : i32, i32, i32
  }
}

</mosaic_0001>

<bundles_post_ra>
// kernel: tpu_custom_call.1
= control target key start
LH: loop header
LB: loop body
LE: loop exit
PB: predicated region body
PF: predicated region fallthrough
CT: control target
= control target key end

     0   :  { %7 = vsyncpa [#allocation3], 0  ;;  %s237_s0 = inlined_call_operand.hbm [shape: f32[2,2,8,128], index: 0, kind: input, shape index: {}]   ;;  %s238_s1 = inlined_call_operand.hbm [shape: f32[2,2,8,128], index: 1, kind: input, shape index: {}]   ;;  %s239_s2 = inlined_call_operand.hbm [shape: f32[2,8,128], index: 2, kind: output, shape index: {}]  }
   0x1   :  { %8 = vsyncpa [#allocation6], 0 }
   0x2   :  { %9 = vsyncpa [#allocation4], 0  ;;  %s170_s9 = smov [#allocation2]   ;;  %s95_s13 = scalar_lea.hbm %s237_s0, 256 }
   0x3   :  { %s15_s10 = sshll.u32 %s170_s9, 4  ;;  %p96_p0 = scmp.ne.s32.totalorder %s237_s0, %s95_s13  ;;  %s16_s10 = int_to_ptr.vmem [resolvable:$true] %s15_s10 }
   0x4   :  { %s97_s18 = scalar_lea.hbm %s237_s0, 512  ;;  %p99_p2 = scmp.lt.u32.totalorder %s95_s13, %s237_s0 }
   0x5   :  { %p98_p1 = scmp.lt.u32.totalorder %s97_s18, %s95_s13 }
   0x7   :  { %p100_p3 = por %p99_p2, %p98_p1 }
   0x9   :  { %p101_p4 = pnand %p100_p3, %p96_p0 }
   0xb   :  { %104 = shalt.err (!%p101_p4)
}
   0xc   :  { %s105_s21 = scalar_lea.vmem %s16_s10, 256  ;;  %p110_p6 = scmp.lt.s32.totalorder %s16_s10, %s16_s10 }
   0xd   :  { %p106_p5 = scmp.ne.s32.totalorder %s16_s10, %s105_s21  ;;  %p111_p7 = scmp.lt.s32.totalorder %s105_s21, %s105_s21 }
   0xf   :  { %p112_p8 = por %p111_p7, %p110_p6 }
  0x11   :  { %p113_p9 = pnand %p112_p8, %p106_p5 }
  0x13   :  { %116 = shalt.err (!%p113_p9)
}
  0x14   :  { %s171_s22 = smov 256   ;;  %s172_s23 = smov 128  }
  0x15   :  { %s173_s24 = smov 8   ;;  %s27_s29 = scalar_lea.hbm %s238_s1, 128 }
  0x16   :  { %21 = dma.hbm_to_vmem [thread:$0]  %s237_s0, 256, %s16_s10, [#allocation3], %s171_s22, %s172_s23, %s173_s24  }
  0x17   :  { %s174_s30 = smov [#allocation5]   ;;  %s141_s6 = scalar_lea.hbm %s238_s1, 384 }
  0x18   :  { %s28_s3 = sshll.u32 %s174_s30, 4  ;;  %p118_p10 = scmp.ne.s32.totalorder %s27_s29, %s141_s6  ;;  %s29_s3 = int_to_ptr.vmem [resolvable:$true] %s28_s3 }
  0x19   :  { %s119_s9 = scalar_lea.hbm %s238_s1, 512  ;;  %p120_p11 = scmp.lt.u32.totalorder %s27_s29, %s238_s1 }
  0x1a   :  { %p121_p12 = scmp.lt.u32.totalorder %s119_s9, %s141_s6  ;;  %p123_p0 = scmp.lt.u32.totalorder %s141_s6, %s27_s29 }
  0x1c   :  { %p122_p13 = por %p121_p12, %p120_p11 }
  0x1e   :  { %p124_p1 = por %p123_p0, %p122_p13 }
  0x20   :  { %p125_p2 = pnand %p124_p1, %p118_p10 }
  0x22   :  { %128 = shalt.err (!%p125_p2)
}
  0x23   :  { %s129_s0 = scalar_lea.vmem %s29_s3, 256  ;;  %p134_p4 = scmp.lt.s32.totalorder %s29_s3, %s29_s3 }
  0x24   :  { %p130_p3 = scmp.ne.s32.totalorder %s29_s3, %s129_s0  ;;  %p135_p5 = scmp.lt.s32.totalorder %s129_s0, %s129_s0 }
  0x26   :  { %p136_p6 = por %p135_p5, %p134_p4 }
  0x28   :  { %p137_p7 = pnand %p136_p6, %p130_p3 }
  0x2a   :  { %140 = shalt.err (!%p137_p7)
}
  0x2b   :  { %34 = dma.hbm_to_vmem [thread:$0]  %s27_s29, 256, %s29_s3, [#allocation6], %s171_s22, %s172_s23, %s173_s24  }
  0x2c   :  { %164 = dma.done.wait [#allocation3], 256  }
  0x2d   :  { %165 = vsyncadd [#allocation3], 4294967040 }
  0x2e   :  { %166 = dma.done.wait [#allocation6], 256  }
  0x2f   :  { %167 = vsyncadd [#allocation6], 4294967040  ;;  %v43_v0 = vld [vmem:[#allocation5] sm:$0xff]  ;;  %v44_v2 = vld [vmem:[#allocation5 + $0x8] sm:$0xff]  ;;  %s175_s1 = smov [#allocation7]  }
  0x30   :  { %v79_v1 = vmul.f32 -1.442695, %v43_v0  ;;  %v80_v3 = vmul.f32 -1.442695, %v44_v2  ;;  %v41_v8 = vld [vmem:[#allocation2] sm:$0xff]  ;;  %v42_v9 = vld [vmem:[#allocation2 + $0x8] sm:$0xff] }
  0x31   :  { %s66_s10 = sshll.u32 %s175_s1, 4  ;;  %s67_s10 = int_to_ptr.vmem [resolvable:$true] %s66_s10 }
  0x32   :  { %87 = vpow2.f32 %v79_v1  ;;  %s142_s13 = scalar_lea.vmem %s67_s10, 256  ;;  %p147_p9 = scmp.lt.s32.totalorder %s67_s10, %s67_s10 }
  0x33   :  { %89 = vpow2.f32 %v80_v3  ;;  %p143_p8 = scmp.ne.s32.totalorder %s67_s10, %s142_s13  ;;  %p148_p10 = scmp.lt.s32.totalorder %s142_s13, %s142_s13 }
  0x35   :  { %p149_p11 = por %p148_p10, %p147_p9 }
  0x37   :  { %p150_p12 = pnand %p149_p11, %p143_p8 }
  0x3c   :  { %v88_v4 = vpop.eup %87 }
  0x3d   :  { %v90_v5 = vpop.eup %89  ;;  %v51_v6 = vadd.f32 1.0, %v88_v4 }
  0x3e   :  { %v52_v7 = vadd.f32 1.0, %v90_v5 }
  0x3f   :  { %91 = vrcp.f32 %v51_v6 }
  0x40   :  { %93 = vrcp.f32 %v52_v7 }
  0x49   :  { %v92_v10 = vpop.eup %91 }
  0x4a   :  { %v94_v11 = vpop.eup %93  ;;  %v57_v12 = vmul.f32 %v92_v10, %v41_v8 }
  0x4b   :  { %v58_v13 = vmul.f32 %v94_v11, %v42_v9 }
  0x4c   :  { %59 = vst [vmem:[#allocation7] sm:$0xff] %v57_v12 }
  0x4d   :  { %60 = vst [vmem:[#allocation7 + $0x8] sm:$0xff] %v58_v13 }
  0x4e   :  { %153 = shalt.err (!%p150_p12)
}
  0x4f   :  { %s154_s16 = scalar_lea.hbm %s239_s2, 256 }
  0x50   :  { %p155_p13 = scmp.ne.s32.totalorder %s239_s2, %s154_s16  ;;  %p158_p0 = scmp.lt.u32.totalorder %s154_s16, %s239_s2 }
  0x52   :  { %p160_p1 = pnand %p158_p0, %p155_p13 }
  0x54   :  { %163 = shalt.err (!%p160_p1)
}
  0x55   :  { %72 = dma.vmem_to_hbm [thread:$0]  %s67_s10, 256, %s239_s2, [#allocation4], %s172_s23, %s172_s23, %s173_s24  }
  0x56   :  { %168 = dma.done.wait [#allocation4], 256  }
  0x57   :  { %169 = vsyncadd [#allocation4], 4294967040 }
  0x58   :  { %76 = vsyncpa [#allocation3], 1 }
  0x59   :  { %77 = vsyncpa [#allocation6], 1 }
  0x5a   :  { %78 = vsyncpa [#allocation4], 1 }

</bundles_post_ra>
